<compile_context>
chip_gen: v6e
topology: v6e:2x2x1
jax: 0.10.0
libtpu: 0.0.40
codegen_flags: <defaults>
</compile_context>

<pallas_src>
import jax
import jax.numpy as jnp
from jax.experimental import pallas as pl
from jax.experimental.pallas import tpu as pltpu


def _reward_mlp_kernel(xp_ref, xr_ref, w1p_ref, w1r_ref, b1_ref,
                       w2_ref, b2_ref, w3_ref, b3_ref, o_ref):
    # fc1 as a split matmul over the two embedding halves (no concat in HBM).
    h1 = jnp.dot(xp_ref[...], w1p_ref[...], preferred_element_type=jnp.float32)
    h1 = h1 + jnp.dot(xr_ref[...], w1r_ref[...],
                      preferred_element_type=jnp.float32)
    h1 = jnp.maximum(h1 + b1_ref[...], 0.0)                     # (TB, 128) f32

    # fc2 on the bf16 MXU path (f32 x f32 takes multi-pass MXU issue);
    # accumulation stays f32.  In the f32 fallback path this cast is a no-op.
    h2 = jnp.dot(h1.astype(w2_ref.dtype), w2_ref[...],
                 preferred_element_type=jnp.float32)
    h2 = jnp.maximum(h2 + b2_ref[...], 0.0)                     # (TB, 64) f32

    # fc3: N=1 matmul wastes the MXU -> VPU multiply + lane reduction instead.
    out = jnp.sum(h2 * w3_ref[...], axis=-1, keepdims=True) + b3_ref[0, 0]
    o_ref[...] = out.astype(o_ref.dtype)                        # (TB, 1) f32


def _round_up(x, m):
    return (x + m - 1) // m * m


def reward_model_forward(prompt_embedding, response_embedding, params,
                         block_b=1024, cast_to_bf16=True):
    """RewardModel forward pass as a single gridded Pallas kernel."""
    w1, b1, w2, b2, w3, b3 = params

    assert prompt_embedding.dtype == response_embedding.dtype, \
        "prompt/response embeddings must share a dtype"
    batch, p_dim = prompt_embedding.shape
    rb, r_dim = response_embedding.shape
    assert rb == batch, "batch mismatch between prompt and response"
    d_total = p_dim + r_dim
    assert w1.shape[0] == d_total, "input_dim mismatch with fc1"
    h1_dim = w1.shape[1]          # 128
    h2_dim = w2.shape[1]          # 64

    # The kernel is HBM-bound on the x stream -> keep it at 2 B/elem unless
    # the caller opts out.  Accumulation stays f32 inside the kernel.
    compute_dtype = jnp.bfloat16 if cast_to_bf16 else prompt_embedding.dtype
    xp = prompt_embedding.astype(compute_dtype)
    xr = response_embedding.astype(compute_dtype)
    x_bytes = jnp.dtype(compute_dtype).itemsize

    # Split fc1's weight once so the kernel never needs the concatenated x.
    w1p = w1[:p_dim].astype(compute_dtype)
    w1r = w1[p_dim:].astype(compute_dtype)
    b1v = b1.reshape(1, h1_dim).astype(jnp.float32)
    w2c = w2.astype(compute_dtype)                               # bf16 MXU fc2
    b2v = b2.reshape(1, h2_dim).astype(jnp.float32)
    w3_row = w3.reshape(1, h2_dim).astype(jnp.float32)           # VPU fc3
    b3s = b3.reshape(1, 1).astype(jnp.float32)                   # SMEM scalar

    # ---- VMEM-budgeted batch tile ---------------------------------------
    # Per batch row: double-buffered xp/xr streams + f32 h1/h2 intermediates
    # + double-buffered f32 output rows.
    per_row = 2 * d_total * x_bytes + (h1_dim + h2_dim) * 4 + 2 * 4
    # Pinned weights/biases (Buffered(1) -> a single VMEM copy each).
    fixed = ((d_total * h1_dim + h1_dim * h2_dim) * x_bytes
             + (h1_dim + 2 * h2_dim + 1) * 4)

    try:
        phys_vmem = int(pltpu.get_tpu_info().vmem_capacity_bytes)
    except Exception:
        phys_vmem = 64 << 20          # smallest current generation (v7x per TC)
    budget = max(16 << 20, (phys_vmem * 3) // 4)   # compiler-scratch headroom

    tb_budget = max(8, ((budget - fixed) // per_row) // 8 * 8)
    # TODO(synk): for very large d_total (>= ~8K) add a K grid axis with an
    # f32 accumulator scratch instead of letting tb shrink below ~256.

    tb = min(tb_budget, block_b, _round_up(batch, 8))
    if batch > 8:
        # Guarantee >=2 grid tiles so the "parallel" batch axis feeds both
        # v7x TensorCores (no effect on single-TC v5e/v6e).
        tb = min(tb, _round_up(pl.cdiv(batch, 2), 8))
    tb = max(8, (tb // 8) * 8)
    num_tiles = pl.cdiv(batch, tb)
    padded_rows = num_tiles * tb

    footprint = fixed + tb * per_row
    vmem_limit = int(min(budget, max(2 * footprint, 32 << 20)))

    # Advisory: this kernel is memory-bound on the x stream.
    flops = 2 * batch * (d_total * h1_dim + h1_dim * h2_dim + h2_dim)
    bytes_accessed = (batch * d_total * x_bytes
                      + (d_total * h1_dim + h1_dim * h2_dim) * x_bytes
                      + (h1_dim + 2 * h2_dim + 1) * 4
                      + batch * 4)
    cost = pl.CostEstimate(flops=flops, transcendentals=0,
                           bytes_accessed=bytes_accessed)

    def const_spec(shape):
        idx = lambda i, _n=len(shape): (0,) * _n
        try:
            # Fetched once -> single-buffered; reclaims VMEM for a larger tb.
            return pl.BlockSpec(shape, idx, pipeline_mode=pl.Buffered(1))
        except TypeError:                 # older jax without pipeline_mode
            return pl.BlockSpec(shape, idx)

    out = pl.pallas_call(
        _reward_mlp_kernel,
        grid=(num_tiles,),
        in_specs=[
            pl.BlockSpec((tb, p_dim), lambda i: (i, 0)),          # prompt rows
            pl.BlockSpec((tb, r_dim), lambda i: (i, 0)),          # response rows
            const_spec((p_dim, h1_dim)),                          # W1[:p_dim]
            const_spec((r_dim, h1_dim)),                          # W1[p_dim:]
            const_spec((1, h1_dim)),                              # b1
            const_spec((h1_dim, h2_dim)),                         # W2
            const_spec((1, h2_dim)),                              # b2
            const_spec((1, h2_dim)),                              # W3 (row)
            pl.BlockSpec((1, 1), lambda i: (0, 0),
                         memory_space=pltpu.MemorySpace.SMEM),    # b3 scalar
        ],
        out_specs=pl.BlockSpec((tb, 1), lambda i: (i, 0)),
        out_shape=jax.ShapeDtypeStruct((padded_rows, 1), jnp.float32),
        compiler_params=pltpu.CompilerParams(
            dimension_semantics=("parallel",),                    # megacore
            vmem_limit_bytes=vmem_limit),
        cost_estimate=cost,
    )(xp, xr, w1p, w1r, b1v, w2c, b2v, w3_row, b3s)

    # Ragged last tile: rows >= batch in the final block are computed from
    # undefined VMEM contents; this [:batch] slice is what discards them.
    # Do NOT remove it.
    return out[:batch]


def init_params(input_dim, key):
    """Deterministic params matching the nn.Linear shapes ([in, out] layout)."""
    k1, k2, k3, k4, k5, k6 = jax.random.split(key, 6)
    w1 = jax.random.normal(k1, (input_dim, 128), jnp.float32) * 0.05
    b1 = jax.random.normal(k2, (128,), jnp.float32) * 0.05
    w2 = jax.random.normal(k3, (128, 64), jnp.float32) * 0.05
    b2 = jax.random.normal(k4, (64,), jnp.float32) * 0.05
    w3 = jax.random.normal(k5, (64, 1), jnp.float32) * 0.05
    b3 = jax.random.normal(k6, (1,), jnp.float32) * 0.05
    return (w1, b1, w2, b2, w3, b3)


def reference_forward(prompt_embedding, response_embedding, params):
    """Pure-JAX f32 reference (mirrors the PyTorch module exactly)."""
    w1, b1, w2, b2, w3, b3 = params
    x = jnp.concatenate([prompt_embedding, response_embedding], axis=-1)
    x = x.astype(jnp.float32)
    x = jnp.maximum(x @ w1 + b1.reshape(1, -1), 0.0)
    x = jnp.maximum(x @ w2 + b2.reshape(1, -1), 0.0)
    return x @ w3 + b3.reshape(1, 1)


if __name__ == "__main__":
    key = jax.random.PRNGKey(0)
    k_params, k_prompt, k_resp = jax.random.split(key, 3)

    batch = 2
    prompt_dim = 16
    response_dim = 16
    input_dim = prompt_dim + response_dim   # fc1 expects the concatenated dim

    params = init_params(input_dim, k_params)
    prompt_embedding = jax.random.normal(k_prompt, (batch, prompt_dim), jnp.float32)
    response_embedding = jax.random.normal(k_resp, (batch, response_dim), jnp.float32)

    ref = reference_forward(prompt_embedding, response_embedding, params)

    # Default (performance) path: bf16 x stream + bf16 MXU, f32 accumulation,
    # f32 output; only bf16 input/weight rounding separates it from f32.
    out_fast = jax.block_until_ready(
        reward_model_forward(prompt_embedding, response_embedding, params))
    assert out_fast.shape == (batch, 1), out_fast.shape
    assert out_fast.dtype == jnp.float32, out_fast.dtype
    assert jnp.allclose(out_fast, ref, atol=5e-2, rtol=5e-2), (out_fast, ref)

    # Full-f32 path: matches the reference tightly.
    out_f32 = jax.block_until_ready(
        reward_model_forward(prompt_embedding, response_embedding, params,
                             cast_to_bf16=False))
    assert out_f32.shape == (batch, 1), out_f32.shape
    assert jnp.allclose(out_f32, ref, atol=1e-5, rtol=1e-5), (out_f32, ref)

    print("KERNEL_OK")
</pallas_src>

<mosaic_0001>
module attributes {stable_mosaic.version = 11 : i64} {
  func.func @_reward_mlp_kernel(%arg0: i32, %arg1: memref<8x16xbf16, #tpu.memory_space<vmem>>, %arg2: memref<8x16xbf16, #tpu.memory_space<vmem>>, %arg3: memref<16x128xbf16, #tpu.memory_space<vmem>>, %arg4: memref<16x128xbf16, #tpu.memory_space<vmem>>, %arg5: memref<1x128xf32, #tpu.memory_space<vmem>>, %arg6: memref<128x64xbf16, #tpu.memory_space<vmem>>, %arg7: memref<1x64xf32, #tpu.memory_space<vmem>>, %arg8: memref<1x64xf32, #tpu.memory_space<vmem>>, %arg9: memref<1x1xf32, #tpu.memory_space<smem>>, %arg10: memref<8x1xf32, #tpu.memory_space<vmem>>) attributes {dimension_semantics = [#tpu.dimension_semantics<parallel>], iteration_bounds = array<i64: 1>, scalar_prefetch = 0 : i64, scratch_operands = 0 : i64, tpu.core_type = #tpu.core_type<tc>, window_params = [{transform_indices = @transform_0, window_bounds = array<i64: 8, 16>}, {transform_indices = @transform_1, window_bounds = array<i64: 8, 16>}, {pipeline_mode = #tpu.pipeline_mode<synchronous>, transform_indices = @transform_2, window_bounds = array<i64: 16, 128>}, {pipeline_mode = #tpu.pipeline_mode<synchronous>, transform_indices = @transform_3, window_bounds = array<i64: 16, 128>}, {pipeline_mode = #tpu.pipeline_mode<synchronous>, transform_indices = @transform_4, window_bounds = array<i64: 1, 128>}, {pipeline_mode = #tpu.pipeline_mode<synchronous>, transform_indices = @transform_5, window_bounds = array<i64: 128, 64>}, {pipeline_mode = #tpu.pipeline_mode<synchronous>, transform_indices = @transform_6, window_bounds = array<i64: 1, 64>}, {pipeline_mode = #tpu.pipeline_mode<synchronous>, transform_indices = @transform_7, window_bounds = array<i64: 1, 64>}, {transform_indices = @transform_8, window_bounds = array<i64: 1, 1>}, {transform_indices = @transform_9, window_bounds = array<i64: 8, 1>}]} {
    %c0 = arith.constant 0 : index
    %c0_0 = arith.constant 0 : index
    %0 = vector.load %arg1[%c0, %c0_0] : memref<8x16xbf16, #tpu.memory_space<vmem>>, vector<8x16xbf16>
    %c0_1 = arith.constant 0 : index
    %c0_2 = arith.constant 0 : index
    %1 = vector.load %arg3[%c0_1, %c0_2] : memref<16x128xbf16, #tpu.memory_space<vmem>>, vector<16x128xbf16>
    %cst = arith.constant dense<0.000000e+00> : vector<8x128xf32>
    %2 = tpu.matmul %0, %1, %cst {dimension_numbers = #tpu.dot_dimension_numbers<[1], [0], [0], [1], [0, 0, 1, 1], [], []>} : vector<8x16xbf16>, vector<16x128xbf16>, vector<8x128xf32> -> vector<8x128xf32>
    %c0_3 = arith.constant 0 : index
    %c0_4 = arith.constant 0 : index
    %3 = vector.load %arg2[%c0_3, %c0_4] : memref<8x16xbf16, #tpu.memory_space<vmem>>, vector<8x16xbf16>
    %c0_5 = arith.constant 0 : index
    %c0_6 = arith.constant 0 : index
    %4 = vector.load %arg4[%c0_5, %c0_6] : memref<16x128xbf16, #tpu.memory_space<vmem>>, vector<16x128xbf16>
    %cst_7 = arith.constant dense<0.000000e+00> : vector<8x128xf32>
    %5 = tpu.matmul %3, %4, %cst_7 {dimension_numbers = #tpu.dot_dimension_numbers<[1], [0], [0], [1], [0, 0, 1, 1], [], []>} : vector<8x16xbf16>, vector<16x128xbf16>, vector<8x128xf32> -> vector<8x128xf32>
    %6 = arith.addf %2, %5 : vector<8x128xf32>
    %c0_8 = arith.constant 0 : index
    %c0_9 = arith.constant 0 : index
    %7 = vector.load %arg5[%c0_8, %c0_9] : memref<1x128xf32, #tpu.memory_space<vmem>>, vector<1x128xf32>
    %8 = vector.broadcast %7 : vector<1x128xf32> to vector<8x128xf32>
    %9 = arith.addf %6, %8 : vector<8x128xf32>
    %cst_10 = arith.constant 0.000000e+00 : f32
    %10 = vector.broadcast %cst_10 : f32 to vector<8x128xf32>
    %11 = arith.maximumf %9, %10 : vector<8x128xf32>
    %12 = arith.truncf %11 : vector<8x128xf32> to vector<8x128xbf16>
    %c0_11 = arith.constant 0 : index
    %c0_12 = arith.constant 0 : index
    %13 = vector.load %arg6[%c0_11, %c0_12] : memref<128x64xbf16, #tpu.memory_space<vmem>>, vector<128x64xbf16>
    %cst_13 = arith.constant dense<0.000000e+00> : vector<8x64xf32>
    %14 = tpu.matmul %12, %13, %cst_13 {dimension_numbers = #tpu.dot_dimension_numbers<[1], [0], [0], [1], [0, 0, 1, 1], [], []>} : vector<8x128xbf16>, vector<128x64xbf16>, vector<8x64xf32> -> vector<8x64xf32>
    %c0_14 = arith.constant 0 : index
    %c0_15 = arith.constant 0 : index
    %15 = vector.load %arg7[%c0_14, %c0_15] : memref<1x64xf32, #tpu.memory_space<vmem>>, vector<1x64xf32>
    %16 = vector.broadcast %15 : vector<1x64xf32> to vector<8x64xf32>
    %17 = arith.addf %14, %16 : vector<8x64xf32>
    %cst_16 = arith.constant 0.000000e+00 : f32
    %18 = vector.broadcast %cst_16 : f32 to vector<8x64xf32>
    %19 = arith.maximumf %17, %18 : vector<8x64xf32>
    %c0_17 = arith.constant 0 : index
    %c0_18 = arith.constant 0 : index
    %20 = vector.load %arg8[%c0_17, %c0_18] : memref<1x64xf32, #tpu.memory_space<vmem>>, vector<1x64xf32>
    %21 = vector.broadcast %20 : vector<1x64xf32> to vector<8x64xf32>
    %22 = arith.mulf %19, %21 : vector<8x64xf32>
    %cst_19 = arith.constant dense<0.000000e+00> : vector<8xf32>
    %23 = vector.multi_reduction <add>, %22, %cst_19 [1] : vector<8x64xf32> to vector<8xf32>
    %24 = vector.shape_cast %23 : vector<8xf32> to vector<8x1xf32>
    %c0_20 = arith.constant 0 : index
    %c0_21 = arith.constant 0 : index
    %25 = memref.load %arg9[%c0_20, %c0_21] : memref<1x1xf32, #tpu.memory_space<smem>>
    %26 = vector.broadcast %25 : f32 to vector<8x1xf32>
    %27 = arith.addf %24, %26 : vector<8x1xf32>
    %c0_22 = arith.constant 0 : index
    %c0_23 = arith.constant 0 : index
    %28 = vector.load %arg10[%c0_22, %c0_23] : memref<8x1xf32, #tpu.memory_space<vmem>>, vector<8x1xf32>
    tpu.vector_store %arg10[%c0_22, %c0_23], %27 {strides = array<i32>} : memref<8x1xf32, #tpu.memory_space<vmem>>, vector<8x1xf32>,
    return
  }
  func.func @transform_0(%arg0: i32) -> (i32, i32) {
    %c0_i32 = arith.constant 0 : i32
    %c0_i32_0 = arith.constant 0 : i32
    return %arg0, %c0_i32 : i32, i32
  }
  func.func @transform_1(%arg0: i32) -> (i32, i32) {
    %c0_i32 = arith.constant 0 : i32
    %c0_i32_0 = arith.constant 0 : i32
    return %arg0, %c0_i32 : i32, i32
  }
  func.func @transform_2(%arg0: i32) -> (i32, i32) {
    %c0_i32 = arith.constant 0 : i32
    %c0_i32_0 = arith.constant 0 : i32
    %c0_i32_1 = arith.constant 0 : i32
    return %c0_i32, %c0_i32_0 : i32, i32
  }
  func.func @transform_3(%arg0: i32) -> (i32, i32) {
    %c0_i32 = arith.constant 0 : i32
    %c0_i32_0 = arith.constant 0 : i32
    %c0_i32_1 = arith.constant 0 : i32
    return %c0_i32, %c0_i32_0 : i32, i32
  }
  func.func @transform_4(%arg0: i32) -> (i32, i32) {
    %c0_i32 = arith.constant 0 : i32
    %c0_i32_0 = arith.constant 0 : i32
    %c0_i32_1 = arith.constant 0 : i32
    return %c0_i32, %c0_i32_0 : i32, i32
  }
  func.func @transform_5(%arg0: i32) -> (i32, i32) {
    %c0_i32 = arith.constant 0 : i32
    %c0_i32_0 = arith.constant 0 : i32
    %c0_i32_1 = arith.constant 0 : i32
    return %c0_i32, %c0_i32_0 : i32, i32
  }
  func.func @transform_6(%arg0: i32) -> (i32, i32) {
    %c0_i32 = arith.constant 0 : i32
    %c0_i32_0 = arith.constant 0 : i32
    %c0_i32_1 = arith.constant 0 : i32
    return %c0_i32, %c0_i32_0 : i32, i32
  }
  func.func @transform_7(%arg0: i32) -> (i32, i32) {
    %c0_i32 = arith.constant 0 : i32
    %c0_i32_0 = arith.constant 0 : i32
    %c0_i32_1 = arith.constant 0 : i32
    return %c0_i32, %c0_i32_0 : i32, i32
  }
  func.func @transform_8(%arg0: i32) -> (i32, i32) {
    %c0_i32 = arith.constant 0 : i32
    %c0_i32_0 = arith.constant 0 : i32
    %c0_i32_1 = arith.constant 0 : i32
    return %c0_i32, %c0_i32_0 : i32, i32
  }
  func.func @transform_9(%arg0: i32) -> (i32, i32) {
    %c0_i32 = arith.constant 0 : i32
    %c0_i32_0 = arith.constant 0 : i32
    return %arg0, %c0_i32 : i32, i32
  }
}

</mosaic_0001>

<bundles_post_ra>
// kernel: tpu_custom_call.1
= control target key start
LH: loop header
LB: loop body
LE: loop exit
PB: predicated region body
PF: predicated region fallthrough
CT: control target
= control target key end

     0   :  { %v55_v0 = vlaneseq  ;;  %v417_v1 = vmov 0.0   ;;  %vm418_vm0 = vmmov 0   ;;  %v419_v3 = vmov 1966171168   ;;  %s544_s3 = inlined_call_operand.vmem [shape: bf16[16,128], index: 3, kind: input, shape index: {}]   ;;  %s545_s1 = inlined_call_operand.vmem [shape: bf16[2,16], index: 1, kind: input, shape index: {}]   ;;  %s546_s0 = inlined_call_operand.vmem [shape: bf16[2,16], index: 0, kind: input, shape index: {}]   ;;  %s547_s2 = inlined_call_operand.vmem [shape: bf16[16,128], index: 2, kind: input, shape index: {}]   ;;  %s548_s5 = inlined_call_operand.vmem [shape: bf16[128,64], index: 5, kind: input, shape index: {}]   ;;  %s549_s4 = inlined_call_operand.vmem [shape: f32[1,128], index: 4, kind: input, shape index: {}]   ;;  %s550_s6 = inlined_call_operand.vmem [shape: f32[1,64], index: 6, kind: input, shape index: {}]   ;;  %s551_s7 = inlined_call_operand.vmem [shape: f32[1,64], index: 7, kind: input, shape index: {}]   ;;  %s552_s8 = inlined_call_operand.<no memory space> [shape: f32[1,1], index: 8, kind: input, shape index: {}]   ;;  %s553_s9 = inlined_call_operand.vmem [shape: f32[8,1], index: 9, kind: output, shape index: {}]  }
   0x1   :  { %372 = vmatprep.subr.bf16.mxu1 %v417_v1  ;;  %v407_v2 = vld [vmem:[%s544_s3] sm:$0xff]   ;;  %374 = vmatprep.mubr.msk.bf16.mxu1 %vm418_vm0, %v417_v1  ;;  %v53_v4 = vunpack.c.l.s4 %v419_v3  ;;  %v409_v20 = vld [vmem:[%s548_s5 + $0x38] sm:$0xff]   ;;  %v410_v23 = vld [vmem:[%s548_s5 + $0x30] sm:$0xff]   ;;  %vm80_vm1 = vcmask 130048   ;;  %vm331_vm2 = vcmask 523264   ;;  %v336_v60 = vstv %s552_s8 }
   0x2   :  { %v40_v5 = vld [vmem:[%s545_s1] sm:$0x1]  ;;  %v41_v6 = vld [vmem:[%s545_s1 + $0x1] sm:$0x1]  ;;  %v42_v7 = vld [vmem:[%s545_s1 + $0x2] sm:$0x1]  ;;  %384 = vmatprep.subr.bf16.mxu0 %v417_v1  ;;  %400 = vmatprep.mubr.msk.bf16.mxu0 %vm418_vm0, %v417_v1 }
   0x3   :  { %373 = vmatpush3.bf16.msra.mxu1 %v407_v2  ;;  %v43_v8 = vld [vmem:[%s545_s1 + $0x3] sm:$0x1]  ;;  %v50_v9 = vcombine.low %v40_v5, %v41_v6  ;;  %v54_v10 = vunpack.c.0.s8 %v53_v4  ;;  %v56_v11 = vshrl.u32 %v55_v0, 7  ;;  %v34_v13 = vld [vmem:[%s546_s0] sm:$0x1]  ;;  %385 = vmatpush3.bf16.msra.mxu0 %v409_v20  ;;  %v411_v29 = vld [vmem:[%s548_s5 + $0x28] sm:$0xff]  }
   0x4   :  { %378 = vmatprep.subr.bf16.mxu1 %v417_v1  ;;  %v51_v12 = vcombine.low %v42_v7, %v43_v8  ;;  %v35_v14 = vld [vmem:[%s546_s0 + $0x1] sm:$0x1]  ;;  %v36_v16 = vld [vmem:[%s546_s0 + $0x2] sm:$0x1]  ;;  %v37_v17 = vld [vmem:[%s546_s0 + $0x3] sm:$0x1]  ;;  %386 = vmatprep.subr.bf16.mxu0 %v417_v1 }
   0x5   :  { %v57_v15 = vsub.s32 %v54_v10, %v56_v11  ;;  %v128_v18 = vcombine.low %v34_v13, %v35_v14  ;;  %v129_v19 = vcombine.low %v36_v16, %v37_v17  ;;  %v408_v25 = vld [vmem:[%s547_s2] sm:$0xff]   ;;  %v413_v33 = vld [vmem:[%s548_s5 + $0x18] sm:$0xff]   ;;  %v414_v34 = vld [vmem:[%s548_s5 + $0x10] sm:$0xff]   ;;  %vm338_vm3 = vcmask 7168  }
   0x6   :  { %v412_v31 = vld [vmem:[%s548_s5 + $0x20] sm:$0xff]   ;;  %v415_v35 = vld [vmem:[%s548_s5 + $0x8] sm:$0xff]  }
   0x7   :  { %v58_v21 = vrot.slane %v50_v9, %v57_v15  ;;  %v65_v22 = vrot.slane %v51_v12, %v57_v15  ;;  %v136_v26 = vrot.slane %v128_v18, %v57_v15  ;;  %v143_v27 = vrot.slane %v129_v19, %v57_v15  ;;  %387 = vmatpush3.bf16.msra.mxu0 %v410_v23  ;;  %v416_v36 = vld [vmem:[%s548_s5] sm:$0xff]  }
   0x8   :  { %388 = vmatprep.subr.bf16.mxu0 %v417_v1  ;;  %v348_v42 = vld [vmem:[%s549_s4] ss:$0 sm:$0xff] }
   0x9   :  { %v66_v24 = vcombine.low %v58_v21, %v65_v22  ;;  %v144_v30 = vcombine.low %v136_v26, %v143_v27  ;;  %v349_v50 = vld [vmem:[%s550_s6] ss:$0 sm:$0xff] }
   0xa   :  { %v358_v54 = vld [vmem:[%s551_s7] ss:$0 sm:$0xff] }
   0xb   :  { %v73_v28 = vrot.slane %v66_v24, %v57_v15  ;;  %389 = vmatpush3.bf16.msra.mxu0 %v411_v29  ;;  %v151_v32 = vrot.slane %v144_v30, %v57_v15 }
   0xc   :  { %390 = vmatprep.subr.bf16.mxu0 %v417_v1 }
   0xd   :  { %375 = vmatmul.mubr.msk.bf16.vlgmr.msra.gmra.mxu1 %vm80_vm1, %v73_v28 }
   0xe   :  { %379 = vmatpush3.bf16.msra.mxu1 %v408_v25  ;;  %380 = vmatprep.mubr.msk.bf16.mxu1 %vm418_vm0, %v417_v1 }
   0xf   :  { %391 = vmatpush3.bf16.msra.mxu0 %v412_v31 }
  0x10   :  { %392 = vmatprep.subr.bf16.mxu0 %v417_v1 }
  0x13   :  { %393 = vmatpush3.bf16.msra.mxu0 %v413_v33 }
  0x14   :  { %394 = vmatprep.subr.bf16.mxu0 %v417_v1 }
  0x15   :  { %381 = vmatmul.mubr.msk.bf16.vlgmr.msra.gmra.mxu1 %vm80_vm1, %v151_v32 }
  0x17   :  { %395 = vmatpush3.bf16.msra.mxu0 %v414_v34 }
  0x18   :  { %396 = vmatprep.subr.bf16.mxu0 %v417_v1 }
  0x1b   :  { %397 = vmatpush3.bf16.msra.mxu0 %v415_v35 }
  0x1c   :  { %398 = vmatprep.subr.bf16.mxu0 %v417_v1 }
  0x1f   :  { %399 = vmatpush3.bf16.msra.mxu0 %v416_v36 }
  0xcd   :  { %v118_v37 = vpop.f32.mrf.mxu1 }
  0xcf   :  { %v376_v38 = vpop.f32.mrf.mxu1 }
  0xd1   :  { %v121_v39 = vpop.f32.mrf.mxu1 }
  0xd3   :  { %v377_v40 = vpop.f32.mrf.mxu1 }
  0xd5   :  { %v195_v41 = vpop.f32.mrf.mxu1 }
  0xd6   :  { %v196_v43 = vadd.f32 %v195_v41, %v118_v37 }
  0xd7   :  { %v382_v44 = vpop.f32.mrf.mxu1 }
  0xd8   :  { %v208_v45 = vadd.f32 %v348_v42, %v196_v43 }
  0xd9   :  { %v198_v46 = vpop.f32.mrf.mxu1 }
  0xda   :  { %v209_v47 = vmax.f32 %v208_v45, 0.0 }
  0xdb   :  { %v383_v48 = vpop.f32.mrf.mxu1 }
  0xdc   :  { %v210_v49 = vpack.c.bf16 %v209_v47, %v209_v47 }
  0xde   :  { %401 = vmatmul.mubr.bf16.vlgmr.msra.gmra.mxu0 %v210_v49 }
 0x19e   :  { %v316_v51 = vpop.f32.mrf.mxu0 }
 0x19f   :  { %v317_v52 = vadd.f32 %v349_v50, %v316_v51 }
 0x1a0   :  { %v402_v53 = vpop.f32.mrf.mxu0 }
 0x1a1   :  { %v322_v55 = vmax.f32 %v317_v52, 0.0 }
 0x1a2   :  { %v319_v56 = vpop.f32.mrf.mxu0 }
 0x1a3   :  { %v330_v57 = vmul.f32 %v358_v54, %v322_v55 }
 0x1a4   :  { %v403_v58 = vpop.f32.mrf.mxu0 }
 0x1a5   :  { %v332_v59 = vsel %vm331_vm2, %v330_v57, 0.0 }
 0x1a6   :  { %333 = vadd.xlane.f32.xlu0 %v332_v59 }
 0x22f   :  { %v334_v61 = vpop.xlane.xlu0 %333 }
 0x230   :  { %v337_v62 = vadd.f32 %v336_v60, %v334_v61 }
 0x232   :  { %339 = vst.msk [vmem:[%s553_s9] sm:$0xff] %vm338_vm3, %v337_v62 }

</bundles_post_ra>
